<compile_context>
chip_gen: v5e
topology: v5e:2x2
jax: 0.10.0
libtpu: 0.0.40
codegen_flags: <defaults>
</compile_context>

<pallas_src>
import functools

import jax
import jax.numpy as jnp
from jax.experimental import pallas as pl
from jax.experimental.pallas import tpu as pltpu


# ----------------------------------------------------------------------------
# kernel body: one (batch, head, q-tile) per grid step
# ----------------------------------------------------------------------------
def _sdpa_kernel(*refs, inv_temp, has_mask, mask_is_4d):
    if has_mask:
        q_ref, k_ref, v_ref, m_ref, o_ref, a_ref = refs
    else:
        q_ref, k_ref, v_ref, o_ref, a_ref = refs

    q = q_ref[0, 0]                                    # (tq, Dk) bf16
    k = k_ref[0, 0]                                    # (Tk, Dk) bf16
    v = v_ref[0, 0]                                    # (Tk, Dv) bf16

    # scores = q @ k^T / temperature   (bf16 MXU inputs, f32 accumulation)
    s = jax.lax.dot_general(
        q, k, (((1,), (1,)), ((), ())),
        preferred_element_type=jnp.float32) * inv_temp  # (tq, Tk) f32

    if has_mask:
        m = m_ref[0, 0] if mask_is_4d else m_ref[0]     # (tq, Tk)
        s = jnp.where(m != 0.0, s, -10000000000.0)      # masked_fill(mask == 0, -1e10)

    # numerically-stable softmax; divide routed to the EUP reciprocal
    s = s - jnp.max(s, axis=-1, keepdims=True)
    e = jnp.exp(s)
    attn = e * pl.reciprocal(jnp.sum(e, axis=-1, keepdims=True), approx=True)

    # output = attn @ v  (attn re-cast to bf16 for the MXU, f32 accumulation)
    out = jnp.dot(attn.astype(jnp.bfloat16), v,
                  preferred_element_type=jnp.float32)   # (tq, Dv) f32

    a_ref[0, 0] = attn
    o_ref[0, 0] = out


def _pick_q_tile(tq_total):
    for cand in (512, 256, 128):
        if tq_total % cand == 0:
            return cand
    return tq_total  # full-dim block (always legal for the (8,128) rule)


# ----------------------------------------------------------------------------
# wrapper: BlockSpecs / grid and the pallas_call
# ----------------------------------------------------------------------------
def scaled_dot_product_attention(q, k, v, mask=None, *, temperature=None):
    """q:(B,H,Tq,Dk) k:(B,H,Tk,Dk) v:(B,H,Tk,Dv) -> (out (B,H,Tq,Dv), attn (B,H,Tq,Tk))."""
    B, H, Tq, Dk = q.shape
    Tk = k.shape[2]
    Dv = v.shape[3]
    if temperature is None:
        temperature = float(Dk) ** 0.5
    inv_temp = float(1.0 / float(temperature))

    tq = _pick_q_tile(Tq)
    grid = (B, H, Tq // tq)

    # bf16 MXU operands (f32 accumulation happens inside the kernel)
    qb = q.astype(jnp.bfloat16)
    kb = k.astype(jnp.bfloat16)
    vb = v.astype(jnp.bfloat16)

    in_specs = [
        pl.BlockSpec((1, 1, tq, Dk), lambda b, h, i: (b, h, i, 0)),
        pl.BlockSpec((1, 1, Tk, Dk), lambda b, h, i: (b, h, 0, 0)),
        pl.BlockSpec((1, 1, Tk, Dv), lambda b, h, i: (b, h, 0, 0)),
    ]
    args = [qb, kb, vb]

    has_mask = mask is not None
    mask_is_4d = False
    if has_mask:
        if mask.ndim == 4:
            mask_is_4d = True
            m = jnp.broadcast_to(mask, (B, H, Tq, Tk)).astype(jnp.float32)
            in_specs.append(pl.BlockSpec((1, 1, tq, Tk), lambda b, h, i: (b, h, i, 0)))
        else:  # (B, Tq, Tk): shared across heads, fetched once per (b, i)
            m = mask.astype(jnp.float32)
            in_specs.append(pl.BlockSpec((1, tq, Tk), lambda b, h, i: (b, i, 0)))
        args.append(m)

    kernel = functools.partial(_sdpa_kernel, inv_temp=inv_temp,
                               has_mask=has_mask, mask_is_4d=mask_is_4d)

    out_shapes = (jax.ShapeDtypeStruct((B, H, Tq, Dv), jnp.float32),
                  jax.ShapeDtypeStruct((B, H, Tq, Tk), jnp.float32))
    out_specs = (pl.BlockSpec((1, 1, tq, Dv), lambda b, h, i: (b, h, i, 0)),
                 pl.BlockSpec((1, 1, tq, Tk), lambda b, h, i: (b, h, i, 0)))

    return pl.pallas_call(
        kernel,
        out_shape=out_shapes,
        grid=grid,
        in_specs=in_specs,
        out_specs=out_specs,
        compiler_params=pltpu.CompilerParams(
            dimension_semantics=("parallel", "parallel", "parallel")),
    )(*args)


# ----------------------------------------------------------------------------
# pure-JAX reference (same bf16-at-MXU policy) for self-validation
# ----------------------------------------------------------------------------
def _reference(q, k, v, mask, temperature):
    qb, kb, vb = (t.astype(jnp.bfloat16) for t in (q, k, v))
    s = jnp.einsum("bhqd,bhkd->bhqk", qb, kb,
                   preferred_element_type=jnp.float32) / temperature
    if mask is not None:
        m = mask if mask.ndim == 4 else mask[:, None, :, :]
        s = jnp.where(m != 0, s, -10000000000.0)
    attn = jax.nn.softmax(s, axis=-1)
    out = jnp.einsum("bhqk,bhkd->bhqd", attn.astype(jnp.bfloat16), vb,
                     preferred_element_type=jnp.float32)
    return out, attn


if __name__ == "__main__":
    B, H, T, D = 2, 4, 16, 16
    temperature = float(D) ** 0.5

    key = jax.random.PRNGKey(0)
    kq, kk, kv = jax.random.split(key, 3)
    q = jax.random.normal(kq, (B, H, T, D), jnp.float32)
    k = jax.random.normal(kk, (B, H, T, D), jnp.float32)
    v = jax.random.normal(kv, (B, H, T, D), jnp.float32)
    # mask shared across heads; last 4 key positions masked out (no empty rows)
    mask = jnp.ones((B, T, T), jnp.float32).at[:, :, T - 4:].set(0.0)

    fwd = jax.jit(functools.partial(scaled_dot_product_attention,
                                    temperature=temperature))

    # ---- no-mask path ----
    out, attn = fwd(q, k, v, None)
    jax.block_until_ready((out, attn))
    ref_out, ref_attn = _reference(q, k, v, None, temperature)
    assert out.shape == (B, H, T, D) and attn.shape == (B, H, T, T)
    assert bool(jnp.all(jnp.isfinite(out))) and bool(jnp.all(jnp.isfinite(attn)))
    assert bool(jnp.allclose(out, ref_out, atol=2e-2, rtol=2e-2))
    assert bool(jnp.allclose(attn, ref_attn, atol=2e-2, rtol=2e-2))

    # ---- masked path ----
    out_m, attn_m = fwd(q, k, v, mask)
    jax.block_until_ready((out_m, attn_m))
    ref_out_m, ref_attn_m = _reference(q, k, v, mask, temperature)
    assert bool(jnp.all(jnp.isfinite(out_m))) and bool(jnp.all(jnp.isfinite(attn_m)))
    assert bool(jnp.allclose(out_m, ref_out_m, atol=2e-2, rtol=2e-2))
    assert bool(jnp.allclose(attn_m, ref_attn_m, atol=2e-2, rtol=2e-2))
    # masked key positions must get (near-)zero attention
    assert bool(jnp.all(attn_m[:, :, :, T - 4:] < 1e-6))

    print("KERNEL_OK")
</pallas_src>

<mosaic_0001>
module attributes {stable_mosaic.version = 11 : i64} {
  func.func @_sdpa_kernel(%arg0: i32, %arg1: i32, %arg2: i32, %arg3: memref<1x1x16x16xbf16, #tpu.memory_space<vmem>>, %arg4: memref<1x1x16x16xbf16, #tpu.memory_space<vmem>>, %arg5: memref<1x1x16x16xbf16, #tpu.memory_space<vmem>>, %arg6: memref<1x1x16x16xf32, #tpu.memory_space<vmem>>, %arg7: memref<1x1x16x16xf32, #tpu.memory_space<vmem>>) attributes {dimension_semantics = [#tpu.dimension_semantics<parallel>, #tpu.dimension_semantics<parallel>, #tpu.dimension_semantics<parallel>], iteration_bounds = array<i64: 2, 4, 1>, scalar_prefetch = 0 : i64, scratch_operands = 0 : i64, tpu.core_type = #tpu.core_type<tc>, window_params = [{transform_indices = @transform_0, window_bounds = array<i64: 1, 1, 16, 16>}, {transform_indices = @transform_1, window_bounds = array<i64: 1, 1, 16, 16>}, {transform_indices = @transform_2, window_bounds = array<i64: 1, 1, 16, 16>}, {transform_indices = @transform_3, window_bounds = array<i64: 1, 1, 16, 16>}, {transform_indices = @transform_4, window_bounds = array<i64: 1, 1, 16, 16>}]} {
    %c0 = arith.constant 0 : index
    %c0_0 = arith.constant 0 : index
    %c0_1 = arith.constant 0 : index
    %c0_2 = arith.constant 0 : index
    %0 = vector.load %arg3[%c0, %c0_0, %c0_1, %c0_2] : memref<1x1x16x16xbf16, #tpu.memory_space<vmem>>, vector<1x1x16x16xbf16>
    %1 = vector.shape_cast %0 : vector<1x1x16x16xbf16> to vector<16x16xbf16>
    %c0_3 = arith.constant 0 : index
    %c0_4 = arith.constant 0 : index
    %c0_5 = arith.constant 0 : index
    %c0_6 = arith.constant 0 : index
    %2 = vector.load %arg4[%c0_3, %c0_4, %c0_5, %c0_6] : memref<1x1x16x16xbf16, #tpu.memory_space<vmem>>, vector<1x1x16x16xbf16>
    %3 = vector.shape_cast %2 : vector<1x1x16x16xbf16> to vector<16x16xbf16>
    %c0_7 = arith.constant 0 : index
    %c0_8 = arith.constant 0 : index
    %c0_9 = arith.constant 0 : index
    %c0_10 = arith.constant 0 : index
    %4 = vector.load %arg5[%c0_7, %c0_8, %c0_9, %c0_10] : memref<1x1x16x16xbf16, #tpu.memory_space<vmem>>, vector<1x1x16x16xbf16>
    %5 = vector.shape_cast %4 : vector<1x1x16x16xbf16> to vector<16x16xbf16>
    %cst = arith.constant dense<0.000000e+00> : vector<16x16xf32>
    %6 = tpu.matmul %1, %3, %cst {dimension_numbers = #tpu.dot_dimension_numbers<[1], [1], [0], [0], [0, 0, 1, 0], [], []>} : vector<16x16xbf16>, vector<16x16xbf16>, vector<16x16xf32> -> vector<16x16xf32>
    %cst_11 = arith.constant 2.500000e-01 : f32
    %7 = vector.broadcast %cst_11 : f32 to vector<16x16xf32>
    %8 = arith.mulf %6, %7 : vector<16x16xf32>
    %cst_12 = arith.constant dense<0xFF800000> : vector<16xf32>
    %9 = vector.multi_reduction <maximumf>, %8, %cst_12 [1] : vector<16x16xf32> to vector<16xf32>
    %10 = vector.shape_cast %9 : vector<16xf32> to vector<16x1xf32>
    %11 = vector.broadcast %10 : vector<16x1xf32> to vector<16x16xf32>
    %12 = arith.subf %8, %11 : vector<16x16xf32>
    %13 = math.exp %12 : vector<16x16xf32>
    %cst_13 = arith.constant dense<0.000000e+00> : vector<16xf32>
    %14 = vector.multi_reduction <add>, %13, %cst_13 [1] : vector<16x16xf32> to vector<16xf32>
    %15 = vector.shape_cast %14 : vector<16xf32> to vector<16x1xf32>
    %16 = tpu.reciprocal %15 {approx = true} : vector<16x1xf32> -> vector<16x1xf32>
    %17 = vector.broadcast %16 : vector<16x1xf32> to vector<16x16xf32>
    %18 = arith.mulf %13, %17 : vector<16x16xf32>
    %19 = arith.truncf %18 : vector<16x16xf32> to vector<16x16xbf16>
    %cst_14 = arith.constant dense<0.000000e+00> : vector<16x16xf32>
    %20 = tpu.matmul %19, %5, %cst_14 {dimension_numbers = #tpu.dot_dimension_numbers<[1], [0], [0], [1], [0, 0, 1, 1], [], []>} : vector<16x16xbf16>, vector<16x16xbf16>, vector<16x16xf32> -> vector<16x16xf32>
    %c0_15 = arith.constant 0 : index
    %c0_16 = arith.constant 0 : index
    %c0_17 = arith.constant 0 : index
    %c0_18 = arith.constant 0 : index
    %21 = vector.load %arg7[%c0_15, %c0_16, %c0_17, %c0_18] : memref<1x1x16x16xf32, #tpu.memory_space<vmem>>, vector<1x1x16x16xf32>
    %22 = vector.shape_cast %21 : vector<1x1x16x16xf32> to vector<16x16xf32>
    %23 = vector.shape_cast %18 : vector<16x16xf32> to vector<1x1x16x16xf32>
    tpu.vector_store %arg7[%c0_15, %c0_16, %c0_17, %c0_18], %23 {strides = array<i32>} : memref<1x1x16x16xf32, #tpu.memory_space<vmem>>, vector<1x1x16x16xf32>,
    %c0_19 = arith.constant 0 : index
    %c0_20 = arith.constant 0 : index
    %c0_21 = arith.constant 0 : index
    %c0_22 = arith.constant 0 : index
    %24 = vector.load %arg6[%c0_19, %c0_20, %c0_21, %c0_22] : memref<1x1x16x16xf32, #tpu.memory_space<vmem>>, vector<1x1x16x16xf32>
    %25 = vector.shape_cast %24 : vector<1x1x16x16xf32> to vector<16x16xf32>
    %26 = vector.shape_cast %20 : vector<16x16xf32> to vector<1x1x16x16xf32>
    tpu.vector_store %arg6[%c0_19, %c0_20, %c0_21, %c0_22], %26 {strides = array<i32>} : memref<1x1x16x16xf32, #tpu.memory_space<vmem>>, vector<1x1x16x16xf32>,
    return
  }
  func.func @transform_0(%arg0: i32, %arg1: i32, %arg2: i32) -> (i32, i32, i32, i32) {
    %c0_i32 = arith.constant 0 : i32
    %c0_i32_0 = arith.constant 0 : i32
    return %arg0, %arg1, %arg2, %c0_i32 : i32, i32, i32, i32
  }
  func.func @transform_1(%arg0: i32, %arg1: i32, %arg2: i32) -> (i32, i32, i32, i32) {
    %c0_i32 = arith.constant 0 : i32
    %c0_i32_0 = arith.constant 0 : i32
    %c0_i32_1 = arith.constant 0 : i32
    return %arg0, %arg1, %c0_i32, %c0_i32_0 : i32, i32, i32, i32
  }
  func.func @transform_2(%arg0: i32, %arg1: i32, %arg2: i32) -> (i32, i32, i32, i32) {
    %c0_i32 = arith.constant 0 : i32
    %c0_i32_0 = arith.constant 0 : i32
    %c0_i32_1 = arith.constant 0 : i32
    return %arg0, %arg1, %c0_i32, %c0_i32_0 : i32, i32, i32, i32
  }
  func.func @transform_3(%arg0: i32, %arg1: i32, %arg2: i32) -> (i32, i32, i32, i32) {
    %c0_i32 = arith.constant 0 : i32
    %c0_i32_0 = arith.constant 0 : i32
    return %arg0, %arg1, %arg2, %c0_i32 : i32, i32, i32, i32
  }
  func.func @transform_4(%arg0: i32, %arg1: i32, %arg2: i32) -> (i32, i32, i32, i32) {
    %c0_i32 = arith.constant 0 : i32
    %c0_i32_0 = arith.constant 0 : i32
    return %arg0, %arg1, %arg2, %c0_i32 : i32, i32, i32, i32
  }
}

</mosaic_0001>

<bundles_post_ra>
// kernel: scaled_dot_product_attention.1
= control target key start
LH: loop header
LB: loop body
LE: loop exit
PB: predicated region body
PF: predicated region fallthrough
CT: control target
= control target key end

     0   :  { %s1099_s0 = inlined_call_operand.vmem [shape: bf16[2,4,16,16], index: 0, kind: input, shape index: {}]   ;;  %s1100_s1 = inlined_call_operand.vmem [shape: bf16[2,4,16,16], index: 1, kind: input, shape index: {}]   ;;  %s1101_s2 = inlined_call_operand.vmem [shape: bf16[2,4,16,16], index: 2, kind: input, shape index: {}]   ;;  %s1102_s3 = inlined_call_operand.hbm [shape: f32[2,4,16,16], index: 3, kind: output, shape index: {0}]   ;;  %s1103_s4 = inlined_call_operand.hbm [shape: f32[2,4,16,16], index: 4, kind: output, shape index: {1}]  }
   0x1   :  { %1105 = sst [smem:[#allocation8_spill]] %s1099_s0 }
   0x2   :  { %10 = vsyncpa [#allocation3], 0 }
   0x3   :  { %12 = vsyncpa [#allocation3 + $0x1], 0 }
   0x4   :  { %13 = vsyncpa [#allocation5], 0 }
   0x5   :  { %15 = vsyncpa [#allocation5 + $0x1], 0  ;;  %s927_s15 = smov 0   ;;  %s929_s16 = smov 0  }
   0x6   :  { %s931_s17 = smov 0   ;;  %s933_s18 = smov 0  }
   0x7   :  { %s935_s19 = smov 0   ;;  %s937_s20 = smov 0  }
   0x8   :  { %s939_s21 = smov 0   ;;  %s941_s22 = smov 0  }
   0x9 LB: > { %s643_s23 = sadd.s32 4294967295, %s898_s22   ;;  %s644_s24 = sadd.s32 4294967294, %s898_s22   ;;  %s898_s22 = sphi %s941_s22, %s21_s22   ;;  %s894_s21 = sphi %s939_s21, %s1116_s21   ;;  %s890_s20 = sphi %s937_s20, %s1115_s20   ;;  %s886_s19 = sphi %s935_s19, %s1114_s19   ;;  %s882_s18 = sphi %s933_s18, %s1113_s18   ;;  %s878_s17 = sphi %s931_s17, %s1112_s17   ;;  %s874_s16 = sphi %s929_s16, %s1111_s16   ;;  %s870_s15 = sphi %s927_s15, %s1110_s15  }
   0xa   : > { %s36_s25 = sadd.s32 1, %s890_s20  ;;  %s40_s26 = sadd.s32 1, %s894_s21 }
   0xb   : > { %p38_p0 = scmp.ge.s32.totalorder %s36_s25, 4  ;;  %p147_p1 = scmp.ne.s32.totalorder %s878_s17, %s874_s16 }
   0xc   : > { %p148_p2 = scmp.eq.s32.totalorder %s643_s23, 7  ;;  %p153_p5 = scmp.ne.s32.totalorder %s874_s16, %s870_s15 }
   0xd   : > { %s1118_s25 = smov (%p38_p0, %s36_s25), 0  ;;  %s1120_s26 = smov (!%p38_p0, %s40_s26), %s894_s21 }
   0xe   : > { %s131_s27 = ssub.s32 %s890_s20, %s1118_s25  ;;  %p978_p3 = por %p148_p2, %p147_p1 }
   0xf   : > { %p42_p4 = scmp.ge.s32.totalorder %s1120_s26, 2  ;;  %p154_p6 = scmp.eq.s32.totalorder %s644_s24, 7 }
  0x10   : > { %p647_p7 = scmp.ge.s32.totalorder %s898_s22, 1  ;;  %p243_p9 = scmp.lt.s32.totalorder %s898_s22, 9 }
  0x11   : > { %s1122_s26 = smov (%p42_p4, %s1120_s26), 0  ;;  %p987_p8 = por %p154_p6, %p153_p5 }
  0x12   : > { %s130_s30 = ssub.s32 %s894_s21, %s1122_s26  ;;  %s137_s5 = sadd.s32 1, %s878_s17 }
  0x13   : > { %s132_s6 = sor.u32 %s131_s27, %s130_s30  ;;  %p244_p10 = pnand %p647_p7, %p243_p9 }
  0x14   : > { %p135_p11 = scmp.eq.s32.totalorder %s132_s6, 0  ;;  %p301_p12 = scmp.lt.s32.totalorder (!%p244_p10), %s886_s19, 1 }
  0x15   : > { %247 = sbr.rel (%p244_p10) target bundleno = 571 (0x23b), region = 32  ;;  %p303_p13 = scmp.lt.s32.totalorder (!%p244_p10), %s882_s18, 3 }
  0x16   : > { %s996_s7 = scalar_select %p135_p11, %s878_s17, %s137_s5  }
  0x17   : > { %s1108_s0 = sld [smem:[#allocation8_spill]] (!%p244_p10)  ;;  %s676_s14 = sshll.u32 (!%p244_p10), %s886_s19, 3 }
  0x1a   : > { %s302_s8 = scalar_select %p301_p12, %s886_s19, 1  ;;  %vm351_vm0 = vcmask 130048  }
  0x1b   : > { %s304_s9 = scalar_select %p303_p13, %s882_s18, 3 }
  0x1c   : > { %s651_s10 = sshll.u32 %s302_s8, 3 }
  0x1d   : > { %s650_s11 = sshll.u32 %s304_s9, 1 }
  0x1e   : > { %s310_s12 = sadd.s32 %s651_s10, %s650_s11  ;;  %s1023_s10 = sand.u32 1, %s874_s16  }
  0x1f   : > { %s1002_s13 = sshll.u32 %s310_s12, 2  ;;  %s1104_s11 = sshll.u32 %s1023_s10, 4 }
  0x20   : > { %s322_s24 = scalar_lea.vmem %s1100_s1, %s1002_s13  ;;  %s312_s5 = scalar_lea.vmem %s1108_s0, %s1002_s13 }
  0x21   : > { %v684_v0 = vld [vmem:[%s322_s24] sm:$0xff]  ;;  %s331_s9 = scalar_lea.vmem %s1101_s2, %s1002_s13  ;;  %s299_s12 = scalar_lea.vmem [#allocation4], %s1104_s11 }
  0x22   : > { %v356_v1 = vsel %vm351_vm0, %v684_v0, 0  ;;  %v683_v2 = vld [vmem:[%s312_s5] sm:$0xff]  ;;  %s675_s13 = sshll.u32 %s882_s18, 1  ;;  %s467_s23 = sshll.u32 %s299_s12, 4  ;;  %s468_s23 = int_to_ptr.vmem [resolvable:$true] %s467_s23 }
  0x23   : > { %365 = vmatpush.bf16.xpose.msra.mxu0 %v356_v1  ;;  %v685_v19 = vld [vmem:[%s331_s9] sm:$0xff]  ;;  %s443_s24 = sadd.s32 %s676_s14, %s675_s13  ;;  %s430_s9 = scalar_lea.sflag [#allocation5], %s1023_s10 }
  0x24   : > { %413 = vmatpush.bf16.msra.mxu1 %v685_v19  ;;  %s677_s27 = sshll.u32 %s443_s24, 3 }
  0x25   : > { %s466_s6 = scalar_lea.hbm %s1103_s4, %s677_s27 }
  0x26   : > { %s469_s8 = sshll.u32 %s466_s6, 4  ;;  %s470_s8 = int_to_ptr.hbm [resolvable:$true] %s469_s8 }
  0x27   : > { %s786_s11 = sshra.s32 %s470_s8, 4  ;;  %s787_s11 = int_to_ptr.hbm [resolvable:$true] %s786_s11 }
  0x28   : > { %s788_s0 = scalar_lea.hbm %s787_s11, 16  ;;  %p793_p4 = scmp.lt.s32.totalorder %s787_s11, %s1103_s4 }
  0x29   : > { %p789_p0 = scmp.ne.s32.totalorder %s787_s11, %s788_s0 }
  0x2a   : > { %667 = vmatmul.msk.bf16.vlgmr.msra.gmra.mxu0 %vm351_vm0, %v683_v2 }
  0x2b   : > { %p790_p1 = pnand %p789_p0, %p978_p3 }
  0x2d   : > { %p791_p2 = pneg %p790_p1 }
  0xa7   : > { %v367_v3 = vpop.f32.mrf.mxu0 }
  0xa8   : > { %v372_v4 = vmul.f32 0.25, %v367_v3 }
  0xaa   : > { %v374_v5 = vsel %vm351_vm0, %v372_v4, -inf }
  0xab   : > { %375 = vmax.xlane.f32.xlu0 %v374_v5 }
  0xaf   : > { %v369_v6 = vpop.f32.mrf.mxu0 }
  0xb0   : > { %v373_v7 = vmul.f32 0.25, %v369_v6 }
  0xb2   : > { %v377_v8 = vsel %vm351_vm0, %v373_v7, -inf }
  0xb3   : > { %378 = vmax.xlane.f32.xlu0 %v377_v8 }
 0x11e   : > { %v376_v9 = vpop.xlane.xlu0 %375 }
 0x11f   : > { %v380_v10 = vsub.f32 %v372_v4, %v376_v9 }
 0x121   : > { %v382_v11 = vmul.f32 1.442695, %v380_v10 }
 0x123   : > { %764 = vpow2.f32 %v382_v11 }
 0x126   : > { %v379_v12 = vpop.xlane.xlu0 %378 }
 0x127   : > { %v381_v13 = vsub.f32 %v373_v7, %v379_v12 }
 0x129   : > { %v765_v14 = vpop.eup %764  ;;  %v384_v15 = vmul.f32 1.442695, %v381_v13 }
 0x12a   : > { %v386_v16 = vsel %vm351_vm0, %v765_v14, 0.0 }
 0x12b   : > { %766 = vpow2.f32 %v384_v15  ;;  %387 = vadd.xlane.f32.xlu1 %v386_v16 }
 0x131   : > { %v767_v17 = vpop.eup %766 }
 0x132   : > { %v389_v18 = vsel %vm351_vm0, %v767_v17, 0.0 }
 0x133   : > { %390 = vadd.xlane.f32.xlu1 %v389_v18 }
 0x19e   : > { %v388_v20 = vpop.xlane.xlu1 %387 }
 0x19f   : > { %768 = vrcp.f32 %v388_v20 }
 0x1a5   : > { %v769_v21 = vpop.eup %768 }
 0x1a6   : > { %v391_v22 = vpop.xlane.xlu1 %390  ;;  %v394_v23 = vmul.f32 %v769_v21, %v765_v14 }
 0x1a7   : > { %770 = vrcp.f32 %v391_v22 }
 0x1a8   : > { %420 = vst.msk [vmem:[%s299_s12] sm:$0xff] %vm351_vm0, %v394_v23 }
 0x1ad   : > { %v771_v24 = vpop.eup %770 }
 0x1ae   : > { %v395_v25 = vmul.f32 %v771_v24, %v767_v17 }
 0x1b0   : > { %v396_v26 = vpack.c.bf16 %v395_v25, %v394_v23  ;;  %421 = vst.msk [vmem:[%s299_s12 + $0x8] sm:$0xff] %vm351_vm0, %v395_v25  ;;  %s792_s12 = scalar_lea.hbm %s1103_s4, 128 }
 0x1b1   : > { %p794_p5 = scmp.lt.s32.totalorder %s792_s12, %s788_s0 }
 0x1b2   : > { %672 = vmatmul.msk.bf16.vlgmr.msra.gmra.mxu1 %vm351_vm0, %v396_v26 }
 0x1b3   : > { %p795_p6 = por %p794_p5, %p793_p4 }
 0x1b5   : > { %p796_p7 = pnand %p795_p6, %p791_p2 }
 0x1b7   : > { %799 = shalt.err (!%p796_p7)
}
 0x1b8   : > { %s900_s24 = smov 128   ;;  %s901_s30 = smov 8  }
 0x1b9   : > { %687 = dma.vmem_to_hbm [thread:$0]  (%p978_p3), %s468_s23, 256, %s470_s8, %s430_s9, %s900_s24, %s900_s24, %s901_s30  }
 0x1ba   : > { %s1109_s5 = sshll.u32 %s1023_s10, 4  ;;  %s445_s18 = scalar_lea.hbm %s1102_s3, %s677_s27 }
 0x1bb   : > { %s292_s6 = scalar_lea.vmem [#allocation2], %s1109_s5  ;;  %s448_s12 = sshll.u32 %s445_s18, 4  ;;  %s449_s12 = int_to_ptr.hbm [resolvable:$true] %s448_s12 }
 0x1bc   : > { %s446_s19 = sshll.u32 %s292_s6, 4  ;;  %s425_s13 = scalar_lea.sflag [#allocation3], %s1023_s10  ;;  %s447_s19 = int_to_ptr.vmem [resolvable:$true] %s446_s19 }
 0x1bd   : > { %s814_s14 = sshra.s32 %s449_s12, 4  ;;  %s820_s5 = scalar_lea.hbm %s1102_s3, 128  ;;  %s815_s14 = int_to_ptr.hbm [resolvable:$true] %s814_s14 }
 0x1be   : > { %s816_s23 = scalar_lea.hbm %s815_s14, 16  ;;  %p821_p12 = scmp.lt.s32.totalorder %s815_s14, %s1102_s3 }
 0x1bf   : > { %p817_p9 = scmp.ne.s32.totalorder %s815_s14, %s816_s23  ;;  %p822_p13 = scmp.lt.s32.totalorder %s820_s5, %s816_s23 }
 0x1c1   : > { %p818_p10 = pnand %p817_p9, %p978_p3  ;;  %p823_p0 = por %p822_p13, %p821_p12 }
 0x1c3   : > { %p819_p11 = pneg %p818_p10 }
 0x1c5   : > { %p824_p1 = pnand %p823_p0, %p819_p11 }
 0x22f   : > { %v415_v27 = vpop.f32.mrf.mxu1 }
 0x230   : > { %422 = vst.msk [vmem:[%s292_s6] sm:$0xff] %vm351_vm0, %v415_v27 }
 0x237   : > { %v417_v28 = vpop.f32.mrf.mxu1 }
 0x238   : > { %423 = vst.msk [vmem:[%s292_s6 + $0x8] sm:$0xff] %vm351_vm0, %v417_v28 }
 0x239   : > { %827 = shalt.err (!%p824_p1)
}
 0x23a   : > { %686 = dma.vmem_to_hbm [thread:$0]  (%p978_p3), %s447_s19, 256, %s449_s12, %s425_s13, %s900_s24, %s900_s24, %s901_s30  }
 0x23b PF: > { %p697_p2 = scmp.ge.s32.totalorder %s898_s22, 2  ;;  %s484_s10 = sand.u32 1, %s870_s15  }
 0x23c   : > { %s485_s6 = scalar_lea.sflag [#allocation3], %s484_s10 }
 0x23d   : > { %p691_p4 = pnand %p697_p2, %p987_p8 }
 0x23f   : > { %p692_p5 = pneg %p691_p4 }
 0x241   : > { %861 = dma.done.wait (%p692_p5), %s485_s6, 256  }
 0x242   : > { %863 = vsyncadd (%p692_p5), %s485_s6, 4294967040  ;;  %s495_s11 = scalar_lea.sflag [#allocation5], %s484_s10 }
 0x243   : > { %865 = dma.done.wait (%p692_p5), %s495_s11, 256  }
 0x244   : > { %867 = vsyncadd (%p692_p5), %s495_s11, 4294967040  ;;  %s21_s22 = sadd.s32 1, %s898_s22   ;;  %s1110_s15 = smov %s874_s16 }
 0x245   : > { %p18_p6 = scmp.ge.s32.totalorder %s21_s22, 10   ;;  %s1111_s16 = smov %s878_s17 }
 0x246   : > { %s1112_s17 = smov %s996_s7  ;;  %s1113_s18 = smov %s890_s20 }
 0x247   : > { %s1114_s19 = smov %s894_s21  ;;  %s1115_s20 = smov %s1118_s25 }
 0x248   : > { %s1116_s21 = smov %s1122_s26  ;;  %20 = sbr.rel (!%p18_p6) target bundleno = 9 (0x9), region = 90 }
 0x24d   :  { %501 = vsyncpa [#allocation3], 1 }
 0x24e   :  { %503 = vsyncpa [#allocation3 + $0x1], 1 }
 0x24f   :  { %504 = vsyncpa [#allocation5], 1 }
 0x250   :  { %506 = vsyncpa [#allocation5 + $0x1], 1 }

</bundles_post_ra>
